<compile_context>
chip_gen: v5e
topology: v5e:2x2
jax: 0.10.0
libtpu: 0.0.40
codegen_flags: <defaults>
</compile_context>

<pallas_src>
import numpy as np
import jax
import jax.numpy as jnp
from jax import lax
from jax.experimental import pallas as pl
from jax.experimental.pallas import tpu as pltpu

LANE = 128


def _round_up(x, m):
    return (x + m - 1) // m * m


def _pad_to(a, shape):
    pads = [(0, s - d) for d, s in zip(a.shape, shape)]
    return jnp.pad(a, pads)


# --------------------------------------------------------------------------
# Fused TRN forward kernel.  grid = (num_batch_blocks,), one step per block
# of `bblock` batch rows; every sampled frame is handled inside the step.
#
#   ht     = ReLU(w1t @ x)                      (HID, d*bb*HW)   "1x1 conv"
#   pooled = pool_mat (.) ht                    (d*bb, HID)      GAP (MXU)
#   feat   = ReLU(pooled @ w2)                  (d*bb, FP)       proj + clf ReLU
#   acc    = sum_f feat[f] @ w3[f]              (bb, BOT)        merge + Linear1
#   out    = ReLU(acc + b3) @ w4 + b4           (bb, NCP)        Linear2
# --------------------------------------------------------------------------
def _make_trn_kernel(d_frames, bblock):
    def kernel(x_ref, pm_ref, w1t_ref, w2_ref, w3_ref, b3_ref,
               w4_ref, b4_ref, o_ref):
        # backbone: pointwise conv over channels for all frames/rows at once.
        ht = jnp.dot(w1t_ref[...], x_ref[...],
                     preferred_element_type=jnp.float32)          # (HID, d*bb*HW)
        ht = jnp.maximum(ht, 0.0)

        # GAP via one matmul against the hoisted block-diag 1/HW matrix.
        pooled = lax.dot_general(                                 # (d*bb, HID)
            pm_ref[...], ht,
            dimension_numbers=(((1,), (1,)), ((), ())),
            preferred_element_type=jnp.float32)

        feat = jnp.dot(pooled, w2_ref[...],
                       preferred_element_type=jnp.float32)        # (d*bb, FP)
        feat = jnp.maximum(feat, 0.0)   # ReLU(concat(f)) == concat(ReLU(f))

        # MergeFrame + RelationModule Linear1, decomposed per sampled frame.
        acc = jnp.dot(feat[0:bblock, :], w3_ref[0],
                      preferred_element_type=jnp.float32)         # (bb, BOT)
        for f in range(1, d_frames):
            acc = acc + jnp.dot(feat[f * bblock:(f + 1) * bblock, :],
                                w3_ref[f],
                                preferred_element_type=jnp.float32)

        h3 = jnp.maximum(acc + b3_ref[...], 0.0)
        out = jnp.dot(h3, w4_ref[...],
                      preferred_element_type=jnp.float32) + b4_ref[...]
        o_ref[...] = out.astype(o_ref.dtype)                      # (bb, NCP)
    return kernel


def trn_forward(x_k, pool_mat, w1t, w2, w3, b3, w4, b4, *, d_frames, bblock):
    nb, C, L = x_k.shape
    HIDP = w1t.shape[0]
    FP = w2.shape[1]
    BOTP = w3.shape[2]
    NCP = w4.shape[1]
    dbb = d_frames * bblock

    kernel = _make_trn_kernel(d_frames, bblock)
    return pl.pallas_call(
        kernel,
        out_shape=jax.ShapeDtypeStruct((nb * bblock, NCP), jnp.float32),
        grid=(nb,),
        in_specs=[
            # everything is a full-array, VMEM-resident block; only x / out
            # are indexed by the batch-block grid axis.
            pl.BlockSpec((pl.Squeezed(), C, L),     lambda i: (i, 0, 0)),
            pl.BlockSpec((dbb, L),                  lambda i: (0, 0)),
            pl.BlockSpec((HIDP, C),                 lambda i: (0, 0)),
            pl.BlockSpec((HIDP, FP),                lambda i: (0, 0)),
            pl.BlockSpec((d_frames, FP, BOTP),      lambda i: (0, 0, 0)),
            pl.BlockSpec((1, BOTP),                 lambda i: (0, 0)),
            pl.BlockSpec((BOTP, NCP),               lambda i: (0, 0)),
            pl.BlockSpec((1, NCP),                  lambda i: (0, 0)),
        ],
        out_specs=pl.BlockSpec((bblock, NCP), lambda i: (i, 0)),
        compiler_params=pltpu.CompilerParams(
            dimension_semantics=("parallel",)),
    )(x_k, pool_mat, w1t, w2, w3, b3, w4, b4)


# --------------------------------------------------------------------------
# TRN module (glue in plain JAX, whole forward in one Pallas kernel call)
# --------------------------------------------------------------------------
class TRNPallas:
    def __init__(self, img_feature_dim, d_frames, num_segments, num_class,
                 in_channels, hidden=32, bottleneck=64):
        self.img_feature_dim = img_feature_dim
        self.d_frames = d_frames
        self.num_segments = num_segments
        self.num_class = num_class

        # deterministic parameter init (same draws as the previous version)
        k = jax.random.PRNGKey(42)
        k1, k2, k3, k4 = jax.random.split(k, 4)
        self.w1 = (jax.random.normal(k1, (in_channels, hidden), jnp.float32)
                   * (1.0 / np.sqrt(in_channels)))
        self.w2 = (jax.random.normal(k2, (hidden, img_feature_dim), jnp.float32)
                   * (1.0 / np.sqrt(hidden)))
        din = d_frames * img_feature_dim
        self.w3 = (jax.random.normal(k3, (din, bottleneck), jnp.float32)
                   * (1.0 / np.sqrt(din)))
        self.b3 = jnp.zeros((1, bottleneck), jnp.float32)
        self.w4 = (jax.random.normal(k4, (bottleneck, num_class), jnp.float32)
                   * (1.0 / np.sqrt(bottleneck)))
        self.b4 = jnp.zeros((1, num_class), jnp.float32)

        # per perf review: only sublane-align (x8) the internal dims; keep the
        # HBM-visible class dim lane-dense (x128) for unmasked output stores.
        HIDP = _round_up(hidden, 8)
        FP = _round_up(img_feature_dim, 8)
        BOTP = _round_up(bottleneck, 8)
        NCP = _round_up(num_class, LANE)

        self.w1t_p = _pad_to(self.w1.T, (HIDP, in_channels))        # (HID, C)
        self.w2_p = _pad_to(self.w2, (HIDP, FP))                    # (HID, FP)
        w3_3d = self.w3.reshape(d_frames, img_feature_dim, bottleneck)
        self.w3_p = _pad_to(w3_3d, (d_frames, FP, BOTP))            # (d, FP, BOT)
        self.b3_p = _pad_to(self.b3, (1, BOTP))                     # (1, BOT)
        self.w4_p = _pad_to(self.w4, (BOTP, NCP))                   # (BOT, NCP)
        self.b4_p = _pad_to(self.b4, (1, NCP))                      # (1, NCP)

    def __call__(self, x, sample_seed=0):
        # x: [B, T, C, H, W] (NCHW per frame, stacked on the frame axis T)
        B, T, C, H, W = x.shape
        HW = H * W

        # frame sampling (np.random.choice without replacement, sorted) —
        # host-side & seeded for determinism.
        rng = np.random.RandomState(sample_seed)
        sample_np = np.sort(rng.choice(np.arange(T), size=self.d_frames,
                                       replace=False))
        sample = jnp.asarray(sample_np, jnp.int32)

        # batch blocking: one grid step per `bblock` rows; blocks >1 run in
        # parallel across v7x's two TensorCores while keeping M = bblock.
        bblock = min(B, 8)
        nb = -(-B // bblock)
        B_pad = nb * bblock

        # tiny wrapper-side gather of the sampled frames (x is only ~KiBs),
        # then lay them out lane-contiguously per batch block:
        #   (nb, C, d*bblock*HW), columns ordered (frame, row-in-block, hw).
        x4 = x.reshape(B, T, C, HW)
        x_s = jnp.take(x4, sample, axis=1)                      # (B, d, C, HW)
        if B_pad != B:
            x_s = jnp.pad(x_s, ((0, B_pad - B), (0, 0), (0, 0), (0, 0)))
        x_k = (x_s.reshape(nb, bblock, self.d_frames, C, HW)
                  .transpose(0, 3, 2, 1, 4)
                  .reshape(nb, C, self.d_frames * bblock * HW))

        # hoisted GAP pooling matrix (block-diagonal 1/HW); identical for
        # every batch block, so it is a single resident input.
        dbb = self.d_frames * bblock
        pool_mat = jnp.asarray(
            np.kron(np.eye(dbb, dtype=np.float32),
                    np.full((1, HW), 1.0 / HW, np.float32)))

        out_p = trn_forward(x_k, pool_mat, self.w1t_p, self.w2_p, self.w3_p,
                            self.b3_p, self.w4_p, self.b4_p,
                            d_frames=self.d_frames, bblock=bblock)
        return out_p[:B, :self.num_class], sample_np

    # pure-JAX reference (unpadded params) for correctness checking.
    def reference(self, x, sample_np):
        B, T, C, H, W = x.shape
        xs = x[:, sample_np]                                  # (B, d, C, H, W)
        xs = jnp.transpose(xs, (0, 1, 3, 4, 2)).reshape(
            B * self.d_frames, H * W, C)
        h = jnp.maximum(xs @ self.w1, 0.0)
        pooled = jnp.mean(h, axis=1)
        feats = pooled @ self.w2
        merged = feats.reshape(B, self.d_frames * self.img_feature_dim)
        h3 = jnp.maximum(jnp.maximum(merged, 0.0) @ self.w3 + self.b3, 0.0)
        return h3 @ self.w4 + self.b4


if __name__ == "__main__":
    B, T, C, H, W = 2, 8, 4, 16, 16
    img_feature_dim, d_frames, num_segments, num_class = 32, 3, 8, 10

    key = jax.random.PRNGKey(0)
    x = jax.random.normal(key, (B, T, C, H, W), jnp.float32)

    model = TRNPallas(img_feature_dim, d_frames, num_segments, num_class,
                      in_channels=C)
    out, sample_np = model(x)
    out = jax.block_until_ready(out)

    assert out.shape == (B, num_class), out.shape
    assert bool(jnp.all(jnp.isfinite(out)))

    ref = jax.block_until_ready(model.reference(x, sample_np))
    np.testing.assert_allclose(np.asarray(out), np.asarray(ref),
                               rtol=1e-4, atol=1e-4)
    print("KERNEL_OK")
</pallas_src>

<mosaic_0001>
module attributes {stable_mosaic.version = 11 : i64} {
  func.func @kernel(%arg0: i32, %arg1: memref<1x4x1536xf32, #tpu.memory_space<vmem>>, %arg2: memref<6x1536xf32, #tpu.memory_space<vmem>>, %arg3: memref<32x4xf32, #tpu.memory_space<vmem>>, %arg4: memref<32x32xf32, #tpu.memory_space<vmem>>, %arg5: memref<3x32x64xf32, #tpu.memory_space<vmem>>, %arg6: memref<1x64xf32, #tpu.memory_space<vmem>>, %arg7: memref<64x128xf32, #tpu.memory_space<vmem>>, %arg8: memref<1x128xf32, #tpu.memory_space<vmem>>, %arg9: memref<2x128xf32, #tpu.memory_space<vmem>>) attributes {dimension_semantics = [#tpu.dimension_semantics<parallel>], iteration_bounds = array<i64: 1>, scalar_prefetch = 0 : i64, scratch_operands = 0 : i64, tpu.core_type = #tpu.core_type<tc>, window_params = [{transform_indices = @transform_0, window_bounds = array<i64: 1, 4, 1536>}, {pipeline_mode = #tpu.pipeline_mode<synchronous>, transform_indices = @transform_1, window_bounds = array<i64: 6, 1536>}, {pipeline_mode = #tpu.pipeline_mode<synchronous>, transform_indices = @transform_2, window_bounds = array<i64: 32, 4>}, {pipeline_mode = #tpu.pipeline_mode<synchronous>, transform_indices = @transform_3, window_bounds = array<i64: 32, 32>}, {pipeline_mode = #tpu.pipeline_mode<synchronous>, transform_indices = @transform_4, window_bounds = array<i64: 3, 32, 64>}, {pipeline_mode = #tpu.pipeline_mode<synchronous>, transform_indices = @transform_5, window_bounds = array<i64: 1, 64>}, {pipeline_mode = #tpu.pipeline_mode<synchronous>, transform_indices = @transform_6, window_bounds = array<i64: 64, 128>}, {pipeline_mode = #tpu.pipeline_mode<synchronous>, transform_indices = @transform_7, window_bounds = array<i64: 1, 128>}, {transform_indices = @transform_8, window_bounds = array<i64: 2, 128>}]} {
    %c0 = arith.constant 0 : index
    %c0_0 = arith.constant 0 : index
    %0 = vector.load %arg3[%c0, %c0_0] : memref<32x4xf32, #tpu.memory_space<vmem>>, vector<32x4xf32>
    %c0_1 = arith.constant 0 : index
    %c0_2 = arith.constant 0 : index
    %c0_3 = arith.constant 0 : index
    %1 = vector.load %arg1[%c0_1, %c0_2, %c0_3] : memref<1x4x1536xf32, #tpu.memory_space<vmem>>, vector<1x4x1536xf32>
    %2 = vector.shape_cast %1 : vector<1x4x1536xf32> to vector<4x1536xf32>
    %cst = arith.constant dense<0.000000e+00> : vector<32x1536xf32>
    %3 = tpu.matmul %0, %2, %cst {dimension_numbers = #tpu.dot_dimension_numbers<[1], [0], [0], [1], [0, 0, 1, 1], [], []>} : vector<32x4xf32>, vector<4x1536xf32>, vector<32x1536xf32> -> vector<32x1536xf32>
    %cst_4 = arith.constant 0.000000e+00 : f32
    %4 = vector.broadcast %cst_4 : f32 to vector<32x1536xf32>
    %5 = arith.maximumf %3, %4 : vector<32x1536xf32>
    %c0_5 = arith.constant 0 : index
    %c0_6 = arith.constant 0 : index
    %6 = vector.load %arg2[%c0_5, %c0_6] : memref<6x1536xf32, #tpu.memory_space<vmem>>, vector<6x1536xf32>
    %cst_7 = arith.constant dense<0.000000e+00> : vector<6x32xf32>
    %7 = tpu.matmul %6, %5, %cst_7 {dimension_numbers = #tpu.dot_dimension_numbers<[1], [1], [0], [0], [0, 0, 1, 0], [], []>} : vector<6x1536xf32>, vector<32x1536xf32>, vector<6x32xf32> -> vector<6x32xf32>
    %c0_8 = arith.constant 0 : index
    %c0_9 = arith.constant 0 : index
    %8 = vector.load %arg4[%c0_8, %c0_9] : memref<32x32xf32, #tpu.memory_space<vmem>>, vector<32x32xf32>
    %cst_10 = arith.constant dense<0.000000e+00> : vector<6x32xf32>
    %9 = tpu.matmul %7, %8, %cst_10 {dimension_numbers = #tpu.dot_dimension_numbers<[1], [0], [0], [1], [0, 0, 1, 1], [], []>} : vector<6x32xf32>, vector<32x32xf32>, vector<6x32xf32> -> vector<6x32xf32>
    %cst_11 = arith.constant 0.000000e+00 : f32
    %10 = vector.broadcast %cst_11 : f32 to vector<6x32xf32>
    %11 = arith.maximumf %9, %10 : vector<6x32xf32>
    %12 = vector.extract_strided_slice %11 {offsets = [0, 0], sizes = [2, 32], strides = [1, 1]} : vector<6x32xf32> to vector<2x32xf32>
    %c0_12 = arith.constant 0 : index
    %c0_13 = arith.constant 0 : index
    %c0_14 = arith.constant 0 : index
    %13 = vector.load %arg5[%c0_12, %c0_13, %c0_14] : memref<3x32x64xf32, #tpu.memory_space<vmem>>, vector<1x32x64xf32>
    %14 = vector.shape_cast %13 : vector<1x32x64xf32> to vector<32x64xf32>
    %cst_15 = arith.constant dense<0.000000e+00> : vector<2x64xf32>
    %15 = tpu.matmul %12, %14, %cst_15 {dimension_numbers = #tpu.dot_dimension_numbers<[1], [0], [0], [1], [0, 0, 1, 1], [], []>} : vector<2x32xf32>, vector<32x64xf32>, vector<2x64xf32> -> vector<2x64xf32>
    %16 = vector.extract_strided_slice %11 {offsets = [2, 0], sizes = [2, 32], strides = [1, 1]} : vector<6x32xf32> to vector<2x32xf32>
    %c1 = arith.constant 1 : index
    %c0_16 = arith.constant 0 : index
    %c0_17 = arith.constant 0 : index
    %17 = vector.load %arg5[%c1, %c0_16, %c0_17] : memref<3x32x64xf32, #tpu.memory_space<vmem>>, vector<1x32x64xf32>
    %18 = vector.shape_cast %17 : vector<1x32x64xf32> to vector<32x64xf32>
    %cst_18 = arith.constant dense<0.000000e+00> : vector<2x64xf32>
    %19 = tpu.matmul %16, %18, %cst_18 {dimension_numbers = #tpu.dot_dimension_numbers<[1], [0], [0], [1], [0, 0, 1, 1], [], []>} : vector<2x32xf32>, vector<32x64xf32>, vector<2x64xf32> -> vector<2x64xf32>
    %20 = arith.addf %15, %19 : vector<2x64xf32>
    %21 = vector.extract_strided_slice %11 {offsets = [4, 0], sizes = [2, 32], strides = [1, 1]} : vector<6x32xf32> to vector<2x32xf32>
    %c2 = arith.constant 2 : index
    %c0_19 = arith.constant 0 : index
    %c0_20 = arith.constant 0 : index
    %22 = vector.load %arg5[%c2, %c0_19, %c0_20] : memref<3x32x64xf32, #tpu.memory_space<vmem>>, vector<1x32x64xf32>
    %23 = vector.shape_cast %22 : vector<1x32x64xf32> to vector<32x64xf32>
    %cst_21 = arith.constant dense<0.000000e+00> : vector<2x64xf32>
    %24 = tpu.matmul %21, %23, %cst_21 {dimension_numbers = #tpu.dot_dimension_numbers<[1], [0], [0], [1], [0, 0, 1, 1], [], []>} : vector<2x32xf32>, vector<32x64xf32>, vector<2x64xf32> -> vector<2x64xf32>
    %25 = arith.addf %20, %24 : vector<2x64xf32>
    %c0_22 = arith.constant 0 : index
    %c0_23 = arith.constant 0 : index
    %26 = vector.load %arg6[%c0_22, %c0_23] : memref<1x64xf32, #tpu.memory_space<vmem>>, vector<1x64xf32>
    %27 = vector.broadcast %26 : vector<1x64xf32> to vector<2x64xf32>
    %28 = arith.addf %25, %27 : vector<2x64xf32>
    %cst_24 = arith.constant 0.000000e+00 : f32
    %29 = vector.broadcast %cst_24 : f32 to vector<2x64xf32>
    %30 = arith.maximumf %28, %29 : vector<2x64xf32>
    %c0_25 = arith.constant 0 : index
    %c0_26 = arith.constant 0 : index
    %31 = vector.load %arg7[%c0_25, %c0_26] : memref<64x128xf32, #tpu.memory_space<vmem>>, vector<64x128xf32>
    %cst_27 = arith.constant dense<0.000000e+00> : vector<2x128xf32>
    %32 = tpu.matmul %30, %31, %cst_27 {dimension_numbers = #tpu.dot_dimension_numbers<[1], [0], [0], [1], [0, 0, 1, 1], [], []>} : vector<2x64xf32>, vector<64x128xf32>, vector<2x128xf32> -> vector<2x128xf32>
    %c0_28 = arith.constant 0 : index
    %c0_29 = arith.constant 0 : index
    %33 = vector.load %arg8[%c0_28, %c0_29] : memref<1x128xf32, #tpu.memory_space<vmem>>, vector<1x128xf32>
    %34 = vector.broadcast %33 : vector<1x128xf32> to vector<2x128xf32>
    %35 = arith.addf %32, %34 : vector<2x128xf32>
    %c0_30 = arith.constant 0 : index
    %c0_31 = arith.constant 0 : index
    %36 = vector.load %arg9[%c0_30, %c0_31] : memref<2x128xf32, #tpu.memory_space<vmem>>, vector<2x128xf32>
    tpu.vector_store %arg9[%c0_30, %c0_31], %35 {strides = array<i32>} : memref<2x128xf32, #tpu.memory_space<vmem>>, vector<2x128xf32>,
    return
  }
  func.func @transform_0(%arg0: i32) -> (i32, i32, i32) {
    %c0_i32 = arith.constant 0 : i32
    %c0_i32_0 = arith.constant 0 : i32
    %c0_i32_1 = arith.constant 0 : i32
    return %arg0, %c0_i32, %c0_i32_0 : i32, i32, i32
  }
  func.func @transform_1(%arg0: i32) -> (i32, i32) {
    %c0_i32 = arith.constant 0 : i32
    %c0_i32_0 = arith.constant 0 : i32
    %c0_i32_1 = arith.constant 0 : i32
    return %c0_i32, %c0_i32_0 : i32, i32
  }
  func.func @transform_2(%arg0: i32) -> (i32, i32) {
    %c0_i32 = arith.constant 0 : i32
    %c0_i32_0 = arith.constant 0 : i32
    %c0_i32_1 = arith.constant 0 : i32
    return %c0_i32, %c0_i32_0 : i32, i32
  }
  func.func @transform_3(%arg0: i32) -> (i32, i32) {
    %c0_i32 = arith.constant 0 : i32
    %c0_i32_0 = arith.constant 0 : i32
    %c0_i32_1 = arith.constant 0 : i32
    return %c0_i32, %c0_i32_0 : i32, i32
  }
  func.func @transform_4(%arg0: i32) -> (i32, i32, i32) {
    %c0_i32 = arith.constant 0 : i32
    %c0_i32_0 = arith.constant 0 : i32
    %c0_i32_1 = arith.constant 0 : i32
    %c0_i32_2 = arith.constant 0 : i32
    return %c0_i32, %c0_i32_0, %c0_i32_1 : i32, i32, i32
  }
  func.func @transform_5(%arg0: i32) -> (i32, i32) {
    %c0_i32 = arith.constant 0 : i32
    %c0_i32_0 = arith.constant 0 : i32
    %c0_i32_1 = arith.constant 0 : i32
    return %c0_i32, %c0_i32_0 : i32, i32
  }
  func.func @transform_6(%arg0: i32) -> (i32, i32) {
    %c0_i32 = arith.constant 0 : i32
    %c0_i32_0 = arith.constant 0 : i32
    %c0_i32_1 = arith.constant 0 : i32
    return %c0_i32, %c0_i32_0 : i32, i32
  }
  func.func @transform_7(%arg0: i32) -> (i32, i32) {
    %c0_i32 = arith.constant 0 : i32
    %c0_i32_0 = arith.constant 0 : i32
    %c0_i32_1 = arith.constant 0 : i32
    return %c0_i32, %c0_i32_0 : i32, i32
  }
  func.func @transform_8(%arg0: i32) -> (i32, i32) {
    %c0_i32 = arith.constant 0 : i32
    %c0_i32_0 = arith.constant 0 : i32
    return %arg0, %c0_i32 : i32, i32
  }
}

</mosaic_0001>

<bundles_post_ra>
// kernel: tpu_custom_call.1
= control target key start
LH: loop header
LB: loop body
LE: loop exit
PB: predicated region body
PF: predicated region fallthrough
CT: control target
= control target key end

     0   :  { %13 = vsyncpa [#allocation3], 0  ;;  %s1401_s0 = inlined_call_operand.hbm [shape: f32[1,4,1536], index: 0, kind: input, shape index: {}]   ;;  %s1402_s1 = inlined_call_operand.hbm [shape: f32[6,1536], index: 1, kind: input, shape index: {}]   ;;  %s1403_s2 = inlined_call_operand.vmem [shape: f32[32,4], index: 2, kind: input, shape index: {}]   ;;  %s1404_s3 = inlined_call_operand.vmem [shape: f32[32,32], index: 3, kind: input, shape index: {}]   ;;  %s1405_s4 = inlined_call_operand.hbm [shape: f32[3,32,64], index: 4, kind: input, shape index: {}]   ;;  %s1406_s5 = inlined_call_operand.vmem [shape: f32[1,64], index: 5, kind: input, shape index: {}]   ;;  %s1407_s6 = inlined_call_operand.hbm [shape: f32[64,128], index: 6, kind: input, shape index: {}]   ;;  %s1408_s7 = inlined_call_operand.vmem [shape: f32[1,128], index: 7, kind: input, shape index: {}]   ;;  %s1409_s8 = inlined_call_operand.hbm [shape: f32[2,128], index: 8, kind: output, shape index: {}]  }
   0x1   :  { %14 = vsyncpa [#allocation6], 0 }
   0x2   :  { %15 = vsyncpa [#allocation9], 0  ;;  %s33_s29 = sshll.u32 %s1402_s1, 4  ;;  %s34_s29 = int_to_ptr.hbm [resolvable:$true] %s33_s29 }
   0x3   :  { %16 = vsyncpa [#allocation4], 0  ;;  %s1190_s30 = smov [#allocation5]   ;;  %s22_s12 = sshll.u32 %s1401_s0, 4  ;;  %s23_s12 = int_to_ptr.hbm [resolvable:$true] %s22_s12 }
   0x4   :  { %s35_s9 = sshll.u32 %s1190_s30, 4  ;;  %s1191_s13 = smov [#allocation2]   ;;  %s36_s9 = int_to_ptr.vmem [resolvable:$true] %s35_s9 }
   0x5   :  { %38 = dma.hbm_to_vmem [thread:$0]  %s34_s29, 1536, %s36_s9, [#allocation6]  }
   0x6   :  { %s24_s14 = sshll.u32 %s1191_s13, 4  ;;  %s47_s17 = sshll.u32 %s1405_s4, 4  ;;  %s25_s14 = int_to_ptr.vmem [resolvable:$true] %s24_s14  ;;  %s48_s17 = int_to_ptr.hbm [resolvable:$true] %s47_s17 }
   0x7   :  { %27 = dma.hbm_to_vmem [thread:$0]  %s23_s12, 768, %s25_s14, [#allocation3]  }
   0x8   :  { %s1192_s1 = smov [#allocation7]   ;;  %s62_s21 = sshll.u32 %s1407_s6, 4  ;;  %s63_s21 = int_to_ptr.hbm [resolvable:$true] %s62_s21 }
   0x9   :  { %s49_s18 = sshll.u32 %s1192_s1, 4  ;;  %s1193_s22 = smov 128   ;;  %s50_s18 = int_to_ptr.vmem [resolvable:$true] %s49_s18 }
   0xa   :  { %s1194_s0 = smov 8   ;;  %s1195_s23 = smov [#allocation8]  }
   0xb   :  { %55 = dma.hbm_to_vmem [thread:$0]  %s48_s17, 1536, %s50_s18, [#allocation6], %s1193_s22, %s1193_s22, %s1194_s0  }
   0xc   :  { %s64_s24 = sshll.u32 %s1195_s23, 4  ;;  %s65_s24 = int_to_ptr.vmem [resolvable:$true] %s64_s24 }
   0xd   :  { %70 = dma.hbm_to_vmem [thread:$0]  %s63_s21, 1024, %s65_s24, [#allocation9], %s1193_s22, %s1193_s22, %s1194_s0  }
   0xe   :  { %1182 = dma.done.wait [#allocation3], 768  }
   0xf   :  { %1183 = vsyncadd [#allocation3], 4294966528 }
  0x10   :  { %1184 = dma.done.wait [#allocation6], 3072  }
  0x11   :  { %1185 = vsyncadd [#allocation6], 4294964224 }
  0x12   :  { %1186 = dma.done.wait [#allocation9], 1024  }
  0x13   :  { %1187 = vsyncadd [#allocation9], 4294966272  ;;  %v93_v0 = vld [vmem:[#allocation2] sm:$0xff]  ;;  %v94_v1 = vld [vmem:[#allocation2 + $0x8] sm:$0xff]  ;;  %vm139_vm0 = vcmask 1043456   ;;  %vm126_vm1 = vcmask 31744  }
  0x14   :  { %105 = vst [vmem:[#allocation1] ss:$2 sm:$0xff] %v93_v0  ;;  %v96_v2 = vld [vmem:[#allocation2 + $0x18] sm:$0xff]  ;;  %v95_v3 = vld [vmem:[#allocation2 + $0x10] sm:$0xff]  ;;  %v98_v4 = vld [vmem:[#allocation2 + $0x28] sm:$0xff]  ;;  %vm816_vm2 = vcmask 261120  }
  0x15   :  { %107 = vst [vmem:[#allocation1 + $0x10] ss:$2 sm:$0xff] %v94_v1  ;;  %v1257_v5 = vld [vmem:[%s1403_s2] sm:$0xff]  ;;  %v1262_v6 = vld [vmem:[%s1403_s2 + $0x18] sm:$0xff]  ;;  %v97_v7 = vld [vmem:[#allocation2 + $0x20] sm:$0xff]  ;;  %vm943_vm3 = vcmask 523264  }
  0x16   :  { %111 = vst [vmem:[#allocation1 + $0x30] ss:$2 sm:$0xff] %v96_v2  ;;  %v90_v16 = vld [vmem:[%s1403_s2 + $0x8] sm:$0xff]  ;;  %v91_v21 = vld [vmem:[%s1403_s2 + $0x10] sm:$0xff]  ;;  %v560_v1 = vld [vmem:[#allocation5] sm:$0x3f] }
  0x17   :  { %109 = vst [vmem:[#allocation1 + $0x20] ss:$2 sm:$0xff] %v95_v3  ;;  %s1196_s18 = smov [#allocation10]   ;;  %s975_s22 = sshll.u32 %s1409_s8, 4  ;;  %s976_s22 = int_to_ptr.hbm [resolvable:$true] %s975_s22 }
  0x18   :  { %s973_s19 = sshll.u32 %s1196_s18, 4  ;;  %s974_s19 = int_to_ptr.vmem [resolvable:$true] %s973_s19 }
  0x1b   :  { %v112_v8 = vld.sshfl [vmem:[#allocation1] sm:$0xff pattern:$0x75316420]  ;;  %v113_v9 = vld.sshfl [vmem:[#allocation1 + $0x8] sm:$0xff pattern:$0x75316420] }
  0x1c   :  { %987 = vmatpush.msk.msra.mxu0 %vm139_vm0, %v112_v8  ;;  %1052 = vmatpush.msk.msra.mxu1 %vm139_vm0, %v112_v8  ;;  %v114_v10 = vld.sshfl [vmem:[#allocation1 + $0x10] sm:$0xff pattern:$0x75316420]  ;;  %v115_v11 = vld.sshfl [vmem:[#allocation1 + $0x18] sm:$0xff pattern:$0x75316420] }
  0x1d   :  { %997 = vmatpush.msk.msra.mxu2 %vm139_vm0, %v114_v10  ;;  %121 = vst [vmem:[#allocation1 + $0x10] ss:$2 sm:$0xff] %v98_v4  ;;  %1002 = vmatpush.msk.msra.mxu3 %vm139_vm0, %v115_v11  ;;  %v118_v12 = vld.sshfl [vmem:[#allocation1 + $0x30] sm:$0xff pattern:$0x75316420] }
  0x1e   :  { %988 = vmatmul.msk.f32.vlgmr.msra.gmra.mxu0 %vm126_vm1, %v1257_v5  ;;  %991 = vmatmul.msk.f32.vlgmr.msra.gmra.mxu1 %vm126_vm1, %v1262_v6  ;;  %120 = vst [vmem:[#allocation1] ss:$2 sm:$0xff] %v97_v7  ;;  %v119_v13 = vld.sshfl [vmem:[#allocation1 + $0x38] sm:$0xff pattern:$0x75316420] }
  0x1f   :  { %998 = vmatmul.msk.f32.vlgmr.msra.gmra.mxu2 %vm126_vm1, %v1257_v5  ;;  %1003 = vmatmul.msk.f32.vlgmr.msra.gmra.mxu3 %vm126_vm1, %v1257_v5  ;;  %v117_v14 = vld.sshfl [vmem:[#allocation1 + $0x28] sm:$0xff pattern:$0x75316420]  ;;  %v116_v15 = vld.sshfl [vmem:[#allocation1 + $0x20] sm:$0xff pattern:$0x75316420] }
  0x20   :  { %1017 = vmatpush.msk.msrb.mxu2 %vm139_vm0, %v118_v12  ;;  %992 = vmatpush.msk.msrb.mxu1 %vm139_vm0, %v113_v9  ;;  %v562_v9 = vld [vmem:[#allocation5 + $0x10] sm:$0x3f] }
  0x21   :  { %1022 = vmatpush.msk.msrb.mxu3 %vm139_vm0, %v119_v13  ;;  %1007 = vmatpush.msk.msrb.mxu0 %vm139_vm0, %v116_v15 }
  0x22   :  { %1012 = vmatpush.msk.msra.mxu1 %vm139_vm0, %v117_v14 }
  0x24   :  { %v124_v17 = vld.sshfl [vmem:[#allocation1 + $0x10] sm:$0xff pattern:$0x75316420]  ;;  %v125_v18 = vld.sshfl [vmem:[#allocation1 + $0x18] sm:$0xff pattern:$0x75316420] }
  0x25   :  { %1037 = vmatpush.msk.msra.mxu2 %vm139_vm0, %v124_v17  ;;  %1042 = vmatpush.msk.msra.mxu3 %vm139_vm0, %v125_v18  ;;  %v122_v19 = vld.sshfl [vmem:[#allocation1] sm:$0xff pattern:$0x75316420]  ;;  %v123_v20 = vld.sshfl [vmem:[#allocation1 + $0x8] sm:$0xff pattern:$0x75316420] }
  0x26   :  { %989 = vmatmul.msk.f32.gmra.mxu0 %vm126_vm1, %v90_v16  ;;  %993 = vmatmul.msk.f32.vlgmr.msrb.gmra.mxu1 %vm126_vm1, %v1257_v5  ;;  %v561_v18 = vld [vmem:[#allocation5 + $0x8] sm:$0x3f] }
  0x27   :  { %999 = vmatmul.msk.f32.gmra.mxu2 %vm126_vm1, %v90_v16  ;;  %1004 = vmatmul.msk.f32.gmra.mxu3 %vm126_vm1, %v90_v16 }
  0x28   :  { %1027 = vmatpush.msk.msra.mxu0 %vm139_vm0, %v122_v19  ;;  %1032 = vmatpush.msk.msrb.mxu1 %vm139_vm0, %v123_v20 }
  0x2e   :  { %990 = vmatmul.msk.f32.gmra.mxu0 %vm126_vm1, %v91_v21  ;;  %994 = vmatmul.msk.f32.gmra.mxu1 %vm126_vm1, %v90_v16 }
  0x2f   :  { %1000 = vmatmul.msk.f32.gmra.mxu2 %vm126_vm1, %v91_v21  ;;  %1005 = vmatmul.msk.f32.gmra.mxu3 %vm126_vm1, %v91_v21 }
  0x36   :  { %995 = vmatmul.msk.f32.gmra.mxu1 %vm126_vm1, %v91_v21  ;;  %1008 = vmatmul.msk.f32.vlgmr.msrb.gmra.mxu0 %vm126_vm1, %v1257_v5 }
  0x37   :  { %1001 = vmatmul.msk.f32.gmra.mxu2 %vm126_vm1, %v1262_v6  ;;  %1006 = vmatmul.msk.f32.gmra.mxu3 %vm126_vm1, %v1262_v6 }
  0x3e   :  { %996 = vmatmul.msk.f32.gmra.mxu1 %vm126_vm1, %v1262_v6  ;;  %1009 = vmatmul.msk.f32.gmra.mxu0 %vm126_vm1, %v90_v16 }
  0x3f   :  { %1018 = vmatmul.msk.f32.vlgmr.msrb.gmra.mxu2 %vm126_vm1, %v1257_v5  ;;  %1023 = vmatmul.msk.f32.vlgmr.msrb.gmra.mxu3 %vm126_vm1, %v1257_v5 }
  0x46   :  { %1010 = vmatmul.msk.f32.gmra.mxu0 %vm126_vm1, %v91_v21  ;;  %1013 = vmatmul.msk.f32.vlgmr.msra.gmra.mxu1 %vm126_vm1, %v1257_v5 }
  0x47   :  { %1019 = vmatmul.msk.f32.gmra.mxu2 %vm126_vm1, %v90_v16  ;;  %1024 = vmatmul.msk.f32.gmra.mxu3 %vm126_vm1, %v90_v16 }
  0x4e   :  { %1011 = vmatmul.msk.f32.gmra.mxu0 %vm126_vm1, %v1262_v6  ;;  %1014 = vmatmul.msk.f32.gmra.mxu1 %vm126_vm1, %v90_v16 }
  0x4f   :  { %1020 = vmatmul.msk.f32.gmra.mxu2 %vm126_vm1, %v91_v21  ;;  %1025 = vmatmul.msk.f32.gmra.mxu3 %vm126_vm1, %v91_v21 }
  0x56   :  { %1015 = vmatmul.msk.f32.gmra.mxu1 %vm126_vm1, %v91_v21  ;;  %1028 = vmatmul.msk.f32.vlgmr.msra.gmra.mxu0 %vm126_vm1, %v1257_v5 }
  0x57   :  { %1021 = vmatmul.msk.f32.gmra.mxu2 %vm126_vm1, %v1262_v6  ;;  %1026 = vmatmul.msk.f32.gmra.mxu3 %vm126_vm1, %v1262_v6 }
  0x5e   :  { %1016 = vmatmul.msk.f32.gmra.mxu1 %vm126_vm1, %v1262_v6  ;;  %1029 = vmatmul.msk.f32.gmra.mxu0 %vm126_vm1, %v90_v16 }
  0x5f   :  { %1038 = vmatmul.msk.f32.vlgmr.msra.gmra.mxu2 %vm126_vm1, %v1257_v5  ;;  %1043 = vmatmul.msk.f32.vlgmr.msra.gmra.mxu3 %vm126_vm1, %v1257_v5 }
  0x66   :  { %1030 = vmatmul.msk.f32.gmra.mxu0 %vm126_vm1, %v91_v21  ;;  %1033 = vmatmul.msk.f32.vlgmr.msrb.gmra.mxu1 %vm126_vm1, %v1257_v5 }
  0x67   :  { %1039 = vmatmul.msk.f32.gmra.mxu2 %vm126_vm1, %v90_v16  ;;  %1044 = vmatmul.msk.f32.gmra.mxu3 %vm126_vm1, %v90_v16 }
  0x6e   :  { %1031 = vmatmul.msk.f32.gmra.mxu0 %vm126_vm1, %v1262_v6  ;;  %1034 = vmatmul.msk.f32.gmra.mxu1 %vm126_vm1, %v90_v16  ;;  %v563_v16 = vld [vmem:[#allocation5 + $0x18] sm:$0x3f] }
  0x6f   :  { %1040 = vmatmul.msk.f32.gmra.mxu2 %vm126_vm1, %v91_v21  ;;  %1045 = vmatmul.msk.f32.gmra.mxu3 %vm126_vm1, %v91_v21 }
  0x76   :  { %1035 = vmatmul.msk.f32.gmra.mxu1 %vm126_vm1, %v91_v21 }
  0x77   :  { %1041 = vmatmul.msk.f32.gmra.mxu2 %vm126_vm1, %v1262_v6  ;;  %1046 = vmatmul.msk.f32.gmra.mxu3 %vm126_vm1, %v1262_v6 }
  0x7e   :  { %1036 = vmatmul.msk.f32.gmra.mxu1 %vm126_vm1, %v1262_v6 }
  0x9b   :  { %v181_v22 = vpop.f32.mrf.mxu0  ;;  %v190_v23 = vpop.f32.mrf.mxu1 }
  0x9c   :  { %v548_v24 = vmax.f32 %v190_v23, 0.0  ;;  %v512_v39 = vmax.f32 %v181_v22, 0.0 }
  0x9e   :  { %584 = vmatpush.xpose.msrb.mxu0 %v548_v24  ;;  %v564_v24 = vld [vmem:[#allocation5 + $0x20] sm:$0x3f] }
  0xa2   :  { %v239_v25 = vpop.f32.mrf.mxu2  ;;  %v268_v26 = vpop.f32.mrf.mxu3 }
  0xa3   :  { %v184_v27 = vpop.f32.mrf.mxu0  ;;  %v210_v28 = vpop.f32.mrf.mxu1  ;;  %v514_v57 = vmax.f32 %v239_v25, 0.0  ;;  %v515_v58 = vmax.f32 %v268_v26, 0.0 }
  0xa4   :  { %v524_v34 = vmax.f32 %v184_v27, 0.0  ;;  %v513_v59 = vmax.f32 %v210_v28, 0.0 }
  0xaa   :  { %v242_v29 = vpop.f32.mrf.mxu2  ;;  %v271_v30 = vpop.f32.mrf.mxu3 }
  0xab   :  { %v187_v31 = vpop.f32.mrf.mxu0  ;;  %v213_v32 = vpop.f32.mrf.mxu1  ;;  %v526_v52 = vmax.f32 %v242_v29, 0.0  ;;  %v527_v53 = vmax.f32 %v271_v30, 0.0 }
  0xac   :  { %v536_v33 = vmax.f32 %v187_v31, 0.0  ;;  %v525_v56 = vmax.f32 %v213_v32, 0.0 }
  0xae   :  { %585 = vmatpush.xpose.msrb.mxu0 %v536_v33  ;;  %v566_v33 = vld [vmem:[#allocation5 + $0x30] sm:$0x3f] }
  0xb2   :  { %v245_v35 = vpop.f32.mrf.mxu2  ;;  %v274_v36 = vpop.f32.mrf.mxu3  ;;  %586 = vmatpush.xpose.msrb.mxu0 %v524_v34  ;;  %v567_v34 = vld [vmem:[#allocation5 + $0x38] sm:$0x3f] }
  0xb3   :  { %v216_v37 = vpop.f32.mrf.mxu1  ;;  %v297_v38 = vpop.f32.mrf.mxu0  ;;  %v538_v47 = vmax.f32 %v245_v35, 0.0  ;;  %v539_v48 = vmax.f32 %v274_v36, 0.0 }
  0xb4   :  { %v537_v49 = vmax.f32 %v216_v37, 0.0  ;;  %v516_v8 = vmax.f32 %v297_v38, 0.0  ;;  %v565_v37 = vld [vmem:[#allocation5 + $0x28] sm:$0x3f] }
  0xb6   :  { %587 = vmatpush.xpose.msrb.mxu0 %v512_v39 }
  0xb9   :  { %588 = vmatmul.f32.vlgmr.msrb.gmra.mxu0 %v560_v1  ;;  %v569_v1 = vld [vmem:[#allocation5 + $0x48] sm:$0x3f] }
  0xba   :  { %v248_v40 = vpop.f32.mrf.mxu2  ;;  %v277_v41 = vpop.f32.mrf.mxu3 }
  0xbb   :  { %v550_v42 = vmax.f32 %v248_v40, 0.0  ;;  %v551_v43 = vmax.f32 %v277_v41, 0.0  ;;  %v219_v44 = vpop.f32.mrf.mxu1  ;;  %v300_v45 = vpop.f32.mrf.mxu0 }
  0xbc   :  { %v549_v46 = vmax.f32 %v219_v44, 0.0  ;;  %v528_v7 = vmax.f32 %v300_v45, 0.0 }
  0xbd   :  { %624 = vmatpush.xpose.msrb.mxu2 %v550_v42  ;;  %644 = vmatpush.xpose.msrb.mxu3 %v551_v43 }
  0xbe   :  { %604 = vmatpush.xpose.msra.mxu1 %v549_v46 }
  0xc1   :  { %625 = vmatpush.xpose.msrb.mxu2 %v538_v47  ;;  %645 = vmatpush.xpose.msrb.mxu3 %v539_v48 }
  0xc2   :  { %v1355_v50 = vpop.f32.mrf.mxu2  ;;  %v1357_v51 = vpop.f32.mrf.mxu3  ;;  %605 = vmatpush.xpose.msra.mxu1 %v537_v49 }
  0xc3   :  { %v303_v54 = vpop.f32.mrf.mxu0  ;;  %v1359_v55 = vpop.f32.mrf.mxu1  ;;  %v518_v30 = vmax.f32 %v1355_v50, 0.0  ;;  %v519_v31 = vmax.f32 %v1357_v51, 0.0 }
  0xc4   :  { %v540_v2 = vmax.f32 %v303_v54, 0.0  ;;  %v517_v32 = vmax.f32 %v1359_v55, 0.0 }
  0xc5   :  { %626 = vmatpush.xpose.msrb.mxu2 %v526_v52  ;;  %646 = vmatpush.xpose.msrb.mxu3 %v527_v53  ;;  %v568_v52 = vld [vmem:[#allocation5 + $0x40] sm:$0x3f] }
  0xc6   :  { %606 = vmatpush.xpose.msra.mxu1 %v525_v56 }
  0xc9   :  { %627 = vmatpush.xpose.msrb.mxu2 %v514_v57  ;;  %647 = vmatpush.xpose.msrb.mxu3 %v515_v58 }
  0xca   :  { %v358_v60 = vpop.f32.mrf.mxu2  ;;  %v387_v61 = vpop.f32.mrf.mxu3  ;;  %607 = vmatpush.xpose.msra.mxu1 %v513_v59 }
  0xcb   :  { %v306_v62 = vpop.f32.mrf.mxu0  ;;  %v329_v63 = vpop.f32.mrf.mxu1  ;;  %v530_v25 = vmax.f32 %v358_v60, 0.0  ;;  %v531_v26 = vmax.f32 %v387_v61, 0.0 }
  0xcc   :  { %v552_v0 = vmax.f32 %v306_v62, 0.0  ;;  %628 = vmatmul.f32.vlgmr.msrb.gmra.mxu2 %v562_v9  ;;  %648 = vmatmul.f32.vlgmr.msrb.gmra.mxu3 %v563_v16  ;;  %v529_v29 = vmax.f32 %v329_v63, 0.0  ;;  %v570_v63 = vld [vmem:[#allocation5 + $0x50] sm:$0x3f] }
  0xcd   :  { %608 = vmatmul.f32.vlgmr.msra.gmra.mxu1 %v561_v18  ;;  %v899_v16 = vld [vmem:[#allocation7 + $0x50] sm:$0xff]  ;;  %v842_v18 = vld [vmem:[#allocation7 + $0x8] sm:$0xff] }
  0xce   :  { %664 = vmatpush.xpose.msra.mxu0 %v552_v0  ;;  %v571_v0 = vld [vmem:[#allocation5 + $0x58] sm:$0x3f] }
  0xd2   :  { %v361_v3 = vpop.f32.mrf.mxu2  ;;  %v390_v4 = vpop.f32.mrf.mxu3  ;;  %665 = vmatpush.xpose.msra.mxu0 %v540_v2 }
  0xd3   :  { %v332_v5 = vpop.f32.mrf.mxu1  ;;  %v1361_v6 = vpop.f32.mrf.mxu0  ;;  %v542_v19 = vmax.f32 %v361_v3, 0.0  ;;  %v543_v20 = vmax.f32 %v390_v4, 0.0  ;;  %v815_v3 = vld [vmem:[%s1404_s3 + $0x18] sm:$0xff]  ;;  %v814_v4 = vld [vmem:[%s1404_s3 + $0x10] sm:$0xff] }
  0xd4   :  { %v541_v21 = vmax.f32 %v332_v5, 0.0  ;;  %v520_v46 = vmax.f32 %v1361_v6, 0.0 }
  0xd6   :  { %666 = vmatpush.xpose.msra.mxu0 %v528_v7 }
  0xda   :  { %v364_v10 = vpop.f32.mrf.mxu2  ;;  %v393_v11 = vpop.f32.mrf.mxu3  ;;  %667 = vmatpush.xpose.msra.mxu0 %v516_v8  ;;  %v813_v8 = vld [vmem:[%s1404_s3 + $0x8] sm:$0xff] }
  0xdb   :  { %v554_v12 = vmax.f32 %v364_v10, 0.0  ;;  %v555_v13 = vmax.f32 %v393_v11, 0.0  ;;  %v335_v14 = vpop.f32.mrf.mxu1  ;;  %v416_v15 = vpop.f32.mrf.mxu0  ;;  %v812_v10 = vld [vmem:[%s1404_s3] sm:$0xff] }
  0xdc   :  { %v553_v17 = vmax.f32 %v335_v14, 0.0  ;;  %v532_v45 = vmax.f32 %v416_v15, 0.0  ;;  %v900_v14 = vld [vmem:[#allocation7 + $0x58] sm:$0xff] }
  0xdd   :  { %704 = vmatpush.xpose.msra.mxu2 %v554_v12  ;;  %724 = vmatpush.xpose.msra.mxu3 %v555_v13  ;;  %v844_v12 = vld [vmem:[#allocation7 + $0x18] sm:$0xff]  ;;  %v843_v13 = vld [vmem:[#allocation7 + $0x10] sm:$0xff] }
  0xde   :  { %684 = vmatpush.xpose.msrb.mxu1 %v553_v17  ;;  %668 = vmatmul.f32.vlgmr.msra.gmra.mxu0 %v564_v24  ;;  %v849_v15 = vld [vmem:[#allocation7 + $0x38] sm:$0xff] }
  0xe1   :  { %705 = vmatpush.xpose.msra.mxu2 %v542_v19  ;;  %725 = vmatpush.xpose.msra.mxu3 %v543_v20 }
  0xe2   :  { %v1363_v22 = vpop.f32.mrf.mxu2  ;;  %v1365_v23 = vpop.f32.mrf.mxu3  ;;  %685 = vmatpush.xpose.msrb.mxu1 %v541_v21 }
  0xe3   :  { %v419_v27 = vpop.f32.mrf.mxu0  ;;  %v1367_v28 = vpop.f32.mrf.mxu1  ;;  %v522_v60 = vmax.f32 %v1363_v22, 0.0  ;;  %v523_v61 = vmax.f32 %v1365_v23, 0.0 }
  0xe4   :  { %v544_v41 = vmax.f32 %v419_v27, 0.0  ;;  %v521_v62 = vmax.f32 %v1367_v28, 0.0 }
  0xe5   :  { %706 = vmatpush.xpose.msra.mxu2 %v530_v25  ;;  %726 = vmatpush.xpose.msra.mxu3 %v531_v26 }
  0xe6   :  { %686 = vmatpush.xpose.msrb.mxu1 %v529_v29 }
  0xe9   :  { %707 = vmatpush.xpose.msra.mxu2 %v518_v30  ;;  %727 = vmatpush.xpose.msra.mxu3 %v519_v31 }
  0xea   :  { %v474_v35 = vpop.f32.mrf.mxu2  ;;  %v503_v36 = vpop.f32.mrf.mxu3  ;;  %687 = vmatpush.xpose.msrb.mxu1 %v517_v32 }
  0xeb   :  { %v422_v38 = vpop.f32.mrf.mxu0  ;;  %v445_v39 = vpop.f32.mrf.mxu1  ;;  %v534_v57 = vmax.f32 %v474_v35, 0.0  ;;  %v535_v58 = vmax.f32 %v503_v36, 0.0  ;;  %v848_v35 = vld [vmem:[#allocation7 + $0x30] sm:$0xff]  ;;  %v841_v36 = vld [vmem:[#allocation7] sm:$0xff] }
  0xec   :  { %v556_v40 = vmax.f32 %v422_v38, 0.0  ;;  %708 = vmatmul.f32.vlgmr.msra.gmra.mxu2 %v566_v33  ;;  %728 = vmatmul.f32.vlgmr.msra.gmra.mxu3 %v567_v34  ;;  %v533_v59 = vmax.f32 %v445_v39, 0.0  ;;  %v847_v38 = vld [vmem:[#allocation7 + $0x28] sm:$0xff]  ;;  %v897_v39 = vld [vmem:[#allocation7 + $0x40] sm:$0xff] }
  0xed   :  { %688 = vmatmul.f32.vlgmr.msrb.gmra.mxu1 %v565_v37  ;;  %v898_v37 = vld [vmem:[#allocation7 + $0x48] sm:$0xff] }
  0xee   :  { %744 = vmatpush.xpose.msrb.mxu0 %v556_v40  ;;  %v846_v40 = vld [vmem:[#allocation7 + $0x20] sm:$0xff] }
  0xf2   :  { %v477_v42 = vpop.f32.mrf.mxu2  ;;  %v506_v43 = vpop.f32.mrf.mxu3  ;;  %745 = vmatpush.xpose.msrb.mxu0 %v544_v41  ;;  %v938_v41 = vld [vmem:[#allocation8 + $0x38] sm:$0xff] }
  0xf3   :  { %v448_v44 = vpop.f32.mrf.mxu1  ;;  %v546_v54 = vmax.f32 %v477_v42, 0.0  ;;  %v547_v55 = vmax.f32 %v506_v43, 0.0 }
  0xf4   :  { %v545_v56 = vmax.f32 %v448_v44, 0.0 }
  0xf6   :  { %746 = vmatpush.xpose.msrb.mxu0 %v532_v45 }
  0xfa   :  { %v480_v47 = vpop.f32.mrf.mxu2  ;;  %v509_v48 = vpop.f32.mrf.mxu3  ;;  %747 = vmatpush.xpose.msrb.mxu0 %v520_v46  ;;  %v937_v46 = vld [vmem:[#allocation8 + $0x30] sm:$0xff] }
  0xfb   :  { %v558_v49 = vmax.f32 %v480_v47, 0.0  ;;  %v559_v50 = vmax.f32 %v509_v48, 0.0  ;;  %v451_v51 = vpop.f32.mrf.mxu1  ;;  %v936_v47 = vld [vmem:[#allocation8 + $0x28] sm:$0xff]  ;;  %v935_v48 = vld [vmem:[#allocation8 + $0x20] sm:$0xff] }
  0xfc   :  { %v557_v53 = vmax.f32 %v451_v51, 0.0  ;;  %v932_v51 = vld [vmem:[#allocation8 + $0x8] sm:$0xff] }
  0xfd   :  { %784 = vmatpush.xpose.msrb.mxu2 %v558_v49  ;;  %804 = vmatpush.xpose.msrb.mxu3 %v559_v50  ;;  %v934_v49 = vld [vmem:[#allocation8 + $0x18] sm:$0xff]  ;;  %v933_v50 = vld [vmem:[#allocation8 + $0x10] sm:$0xff] }
  0xfe   :  { %764 = vmatpush.xpose.msra.mxu1 %v557_v53  ;;  %748 = vmatmul.f32.vlgmr.msrb.gmra.mxu0 %v568_v52  ;;  %v931_v52 = vld [vmem:[#allocation8] sm:$0xff] }
  0xff   :  { %832 = vmatpush.msra.mxu0 %v815_v3 }
 0x101   :  { %785 = vmatpush.xpose.msrb.mxu2 %v546_v54  ;;  %805 = vmatpush.xpose.msrb.mxu3 %v547_v55 }
 0x102   :  { %765 = vmatpush.xpose.msra.mxu1 %v545_v56  ;;  %833 = vmatpush.msra.mxu0 %v814_v4  ;;  %v1060_v56 = vld [vmem:[%s1406_s5] ss:$0 sm:$0xff] }
 0x104   :  { %834 = vmatpush.msra.mxu0 %v813_v8 }
 0x105   :  { %786 = vmatpush.xpose.msrb.mxu2 %v534_v57  ;;  %806 = vmatpush.xpose.msrb.mxu3 %v535_v58 }
 0x106   :  { %766 = vmatpush.xpose.msra.mxu1 %v533_v59  ;;  %835 = vmatpush.msra.mxu0 %v812_v10 }
 0x108   :  { %955 = vmatpush.msrb.mxu0 %v938_v41 }
 0x109   :  { %787 = vmatpush.xpose.msrb.mxu2 %v522_v60  ;;  %807 = vmatpush.xpose.msrb.mxu3 %v523_v61  ;;  %v1061_v61 = vld [vmem:[%s1408_s7] ss:$0 sm:$0xff] }
 0x10a   :  { %767 = vmatpush.xpose.msra.mxu1 %v521_v62  ;;  %956 = vmatpush.msrb.mxu0 %v937_v46 }
 0x10c   :  { %788 = vmatmul.f32.vlgmr.msrb.gmra.mxu2 %v570_v63  ;;  %808 = vmatmul.f32.vlgmr.msrb.gmra.mxu3 %v571_v0 }
 0x10d   :  { %768 = vmatmul.f32.vlgmr.msra.gmra.mxu1 %v569_v1  ;;  %888 = vmatpush.msra.mxu2 %v844_v12 }
 0x10e   :  { %916 = vmatpush.msra.mxu3 %v900_v14  ;;  %866 = vmatpush.msrb.mxu1 %v849_v15 }
 0x10f   :  { %889 = vmatpush.msra.mxu2 %v843_v13  ;;  %957 = vmatpush.msrb.mxu0 %v936_v47 }
 0x110   :  { %917 = vmatpush.msra.mxu3 %v899_v16  ;;  %867 = vmatpush.msrb.mxu1 %v848_v35 }
 0x111   :  { %890 = vmatpush.msra.mxu2 %v842_v18  ;;  %958 = vmatpush.msrb.mxu0 %v935_v48 }
 0x112   :  { %918 = vmatpush.msra.mxu3 %v898_v37  ;;  %868 = vmatpush.msrb.mxu1 %v847_v38 }
 0x113   :  { %891 = vmatpush.msra.mxu2 %v841_v36  ;;  %959 = vmatpush.msrb.mxu0 %v934_v49 }
 0x114   :  { %919 = vmatpush.msra.mxu3 %v897_v39  ;;  %869 = vmatpush.msrb.mxu1 %v846_v40 }
 0x115   :  { %960 = vmatpush.msrb.mxu0 %v933_v50 }
 0x117   :  { %961 = vmatpush.msrb.mxu0 %v932_v51 }
 0x119   :  { %962 = vmatpush.msrb.mxu0 %v931_v52 }
 0x136   :  { %v589_v5 = vpop.f32.mrf.mxu0 }
 0x14a   :  { %v609_v2 = vpop.f32.mrf.mxu1 }
 0x14b   :  { %v610_v6 = vadd.f32 %v609_v2, %v589_v5 }
 0x14f   :  { %v629_v7 = vpop.f32.mrf.mxu2  ;;  %v649_v11 = vpop.f32.mrf.mxu3 }
 0x150   :  { %v630_v9 = vadd.f32 %v629_v7, %v610_v6 }
 0x152   :  { %v650_v17 = vadd.f32 %v649_v11, %v630_v9 }
 0x15b   :  { %v669_v19 = vpop.f32.mrf.mxu0 }
 0x15c   :  { %v670_v20 = vadd.f32 %v669_v19, %v650_v17 }
 0x16a   :  { %v689_v21 = vpop.f32.mrf.mxu1 }
 0x16b   :  { %v690_v22 = vadd.f32 %v689_v21, %v670_v20 }
 0x16f   :  { %v709_v23 = vpop.f32.mrf.mxu2  ;;  %v729_v25 = vpop.f32.mrf.mxu3 }
 0x170   :  { %v710_v24 = vadd.f32 %v709_v23, %v690_v22 }
 0x172   :  { %v730_v26 = vadd.f32 %v729_v25, %v710_v24 }
 0x17b   :  { %v749_v27 = vpop.f32.mrf.mxu0 }
 0x17c   :  { %v750_v28 = vadd.f32 %v749_v27, %v730_v26 }
 0x18a   :  { %v769_v29 = vpop.f32.mrf.mxu1 }
 0x18b   :  { %v770_v30 = vadd.f32 %v769_v29, %v750_v28 }
 0x18f   :  { %v789_v31 = vpop.f32.mrf.mxu2  ;;  %v809_v32 = vpop.f32.mrf.mxu3 }
 0x190   :  { %v790_v33 = vadd.f32 %v789_v31, %v770_v30 }
 0x192   :  { %v810_v34 = vadd.f32 %v809_v32, %v790_v33 }
 0x194   :  { %1047 = vmatmul.msk.f32.vlgmr.msra.gmra.mxu0 %vm816_vm2, %v810_v34 }
 0x211   :  { %v837_v42 = vpop.f32.mrf.mxu0 }
 0x212   :  { %v840_v43 = vmax.f32 %v837_v42, 0.0 }
 0x214   :  { %v851_v44 = vrot.slane %v840_v43, 2  ;;  %v901_v45 = vrot.slane %v840_v43, 4  ;;  %1049 = vmatmul.msk.f32.vlgmr.msra.gmra.mxu2 %vm816_vm2, %v840_v43 }
 0x216   :  { %1048 = vmatmul.msk.f32.vlgmr.msrb.gmra.mxu1 %vm816_vm2, %v851_v44  ;;  %1050 = vmatmul.msk.f32.vlgmr.msra.gmra.mxu3 %vm816_vm2, %v901_v45 }
 0x293   :  { %v871_v53 = vpop.f32.mrf.mxu1 }
 0x297   :  { %v893_v54 = vpop.f32.mrf.mxu2 }
 0x298   :  { %v894_v55 = vadd.f32 %v893_v54, %v871_v53 }
 0x299   :  { %v921_v57 = vpop.f32.mrf.mxu3 }
 0x29a   :  { %v924_v58 = vadd.f32 %v921_v57, %v894_v55 }
 0x29c   :  { %v929_v59 = vadd.f32 %v1060_v56, %v924_v58 }
 0x29e   :  { %v930_v60 = vmax.f32 %v929_v59, 0.0 }
 0x2a0   :  { %1051 = vmatmul.msk.f32.vlgmr.msrb.gmra.mxu0 %vm943_vm3, %v930_v60 }
 0x31d   :  { %v964_v62 = vpop.f32.mrf.mxu0 }
 0x31e   :  { %v965_v63 = vadd.f32 %v1061_v61, %v964_v62 }
 0x320   :  { %967 = vst [vmem:[#allocation10] sm:$0x3] %v965_v63 }
 0x321   :  { %978 = dma.vmem_to_hbm [thread:$0]  %s974_s19, 32, %s976_s22, [#allocation4]  }
 0x322   :  { %1188 = dma.done.wait [#allocation4], 32  }
 0x323   :  { %1189 = vsyncadd [#allocation4], 4294967264 }
 0x324   :  { %983 = vsyncpa [#allocation3], 1 }
 0x325   :  { %984 = vsyncpa [#allocation6], 1 }
 0x326   :  { %985 = vsyncpa [#allocation9], 1 }
 0x327   :  { %986 = vsyncpa [#allocation4], 1 }

</bundles_post_ra>
